<compile_context>
chip_gen: v6e
topology: v6e:2x2x1
jax: 0.10.0
libtpu: 0.0.40
codegen_flags: <defaults>
</compile_context>

<pallas_src>
import jax
import jax.numpy as jnp
from jax.experimental import pallas as pl
from jax.experimental.pallas import tpu as pltpu


def _add_pe_kernel(x_ref, pe_ref, o_ref):
    # x_ref: (TB, TF); pe_ref: (1, TF) -> broadcasts over the batch-chunk rows.
    o_ref[...] = x_ref[...] + pe_ref[...]


def _plan_tiles(B, F, itemsize, target_bytes):
    """Pick (TB, TF): batch rows and lane width per block.

    Keeps each x block at ~target_bytes, TF a multiple of 128 (or the full F
    when F % 128 != 0, which is the only legal option), and TB a multiple of
    the dtype's sublane packing (8 f32 / 16 bf16 / 32 int8-fp8) or the full B.
    """
    pack = max(8, 32 // itemsize)  # rows per fully-packed sublane group

    if F % 128 == 0:
        # Largest multiple of 128 such that pack rows * TF still fits target.
        max_tf = max(128, (target_bytes // (pack * itemsize)) // 128 * 128)
        TF = min(F, max_tf)
    else:
        # Last dim must equal the full array dim when it is not 128-aligned.
        TF = F

    rows = max(1, target_bytes // max(1, TF * itemsize))
    if rows >= B:
        TB = B                                   # whole batch in one block
    else:
        TB = min(B, max(pack, (rows // pack) * pack))
    # Legality: TB is either a multiple of 8 (pack >= 8) or equals B.
    return TB, TF


def trainable_positional_encoding(x, pos_enc, *, target_bytes=2 * 1024 * 1024):
    """x: (B, N, D); pos_enc: (1, N, D). Returns x + pos_enc (broadcast over B)."""
    B, N, D = x.shape
    assert pos_enc.shape == (1, N, D)
    pos_enc = pos_enc.astype(x.dtype)

    F = N * D
    itemsize = jnp.dtype(x.dtype).itemsize

    # Lane-dense layout for both the aligned and unaligned-F cases.
    x2 = x.reshape(B, F)
    pe2 = pos_enc.reshape(1, F)

    TB, TF = _plan_tiles(B, F, itemsize, target_bytes)
    grid = (pl.cdiv(B, TB), pl.cdiv(F, TF))

    out = pl.pallas_call(
        _add_pe_kernel,
        out_shape=jax.ShapeDtypeStruct((B, F), x.dtype),
        grid_spec=pltpu.PrefetchScalarGridSpec(
            num_scalar_prefetch=0,
            grid=grid,
            in_specs=[
                # x: (batch-chunk, lane-chunk)
                pl.BlockSpec((TB, TF), lambda i, j: (i, j)),
                # pe: one row, same lane-chunk; tiny vs. the x traffic and
                # re-fetched only when the lane-chunk index changes.
                pl.BlockSpec((1, TF), lambda i, j: (0, j)),
            ],
            out_specs=pl.BlockSpec((TB, TF), lambda i, j: (i, j)),
        ),
        compiler_params=pltpu.CompilerParams(
            # Both axes are independent -> shardable across v7x's 2 TensorCores.
            dimension_semantics=("parallel", "parallel"),
            # Headroom for the forced full-F block when F % 128 != 0; still
            # well under every generation's physical VMEM.
            vmem_limit_bytes=32 * 1024 * 1024,
        ),
    )(x2, pe2)
    return out.reshape(B, N, D)


if __name__ == "__main__":
    # Module config: num_patches=8, embed_dim=32; batch=2
    B, num_patches, embed_dim = 2, 8, 32

    key = jax.random.PRNGKey(0)
    k_x, k_pe, k2, k3, k4, k5 = jax.random.split(key, 6)

    # Deterministic "parameter" init (mirrors torch.randn(1, num_patches, embed_dim))
    pos_enc = jax.random.normal(k_pe, (1, num_patches, embed_dim), dtype=jnp.float32)
    x = jax.random.normal(k_x, (B, num_patches, embed_dim), dtype=jnp.float32)

    out = jax.block_until_ready(trainable_positional_encoding(x, pos_enc))
    assert out.shape == (B, num_patches, embed_dim)
    assert jnp.allclose(out, x + pos_enc, atol=1e-6), "mismatch (lane-aligned path)"

    # F = N*D not a multiple of 128 (192): flattened full-F block, lane-dense.
    x2 = jax.random.normal(k2, (2, 8, 24), dtype=jnp.float32)
    pe2 = jax.random.normal(k3, (1, 8, 24), dtype=jnp.float32)
    out2 = jax.block_until_ready(trainable_positional_encoding(x2, pe2))
    assert jnp.allclose(out2, x2 + pe2, atol=1e-6), "mismatch (unaligned-F path)"

    # Tiled path with partial blocks: small target forces TB=8, TF=1024 ->
    # grid (3, 2); B=20 is not a multiple of TB and exercises OOB padding.
    x3 = jax.random.normal(k4, (20, 16, 128), dtype=jnp.float32)
    pe3 = jax.random.normal(k5, (1, 16, 128), dtype=jnp.float32)
    out3 = jax.block_until_ready(
        trainable_positional_encoding(x3, pe3, target_bytes=32 * 1024))
    assert jnp.allclose(out3, x3 + pe3, atol=1e-6), "mismatch (tiled / partial blocks)"

    # bf16 (sublane packing factor 16) sanity check.
    xb, peb = x.astype(jnp.bfloat16), pos_enc.astype(jnp.bfloat16)
    outb = jax.block_until_ready(trainable_positional_encoding(xb, peb))
    assert jnp.allclose(outb.astype(jnp.float32), (xb + peb).astype(jnp.float32),
                        atol=1e-2), "mismatch (bf16 path)"

    print("KERNEL_OK")
</pallas_src>

<mosaic_0001>
module attributes {stable_mosaic.version = 11 : i64} {
  func.func @_add_pe_kernel(%arg0: i32, %arg1: i32, %arg2: memref<2x256xf32, #tpu.memory_space<vmem>>, %arg3: memref<1x256xf32, #tpu.memory_space<vmem>>, %arg4: memref<2x256xf32, #tpu.memory_space<vmem>>) attributes {dimension_semantics = [#tpu.dimension_semantics<parallel>, #tpu.dimension_semantics<parallel>], iteration_bounds = array<i64: 1, 1>, scalar_prefetch = 0 : i64, scratch_operands = 0 : i64, tpu.core_type = #tpu.core_type<tc>, window_params = [{transform_indices = @transform_0, window_bounds = array<i64: 2, 256>}, {transform_indices = @transform_1, window_bounds = array<i64: 1, 256>}, {transform_indices = @transform_2, window_bounds = array<i64: 2, 256>}]} {
    %c0 = arith.constant 0 : index
    %c0_0 = arith.constant 0 : index
    %0 = vector.load %arg2[%c0, %c0_0] : memref<2x256xf32, #tpu.memory_space<vmem>>, vector<2x256xf32>
    %c0_1 = arith.constant 0 : index
    %c0_2 = arith.constant 0 : index
    %1 = vector.load %arg3[%c0_1, %c0_2] : memref<1x256xf32, #tpu.memory_space<vmem>>, vector<1x256xf32>
    %2 = vector.broadcast %1 : vector<1x256xf32> to vector<2x256xf32>
    %3 = arith.addf %0, %2 : vector<2x256xf32>
    %c0_3 = arith.constant 0 : index
    %c0_4 = arith.constant 0 : index
    %4 = vector.load %arg4[%c0_3, %c0_4] : memref<2x256xf32, #tpu.memory_space<vmem>>, vector<2x256xf32>
    tpu.vector_store %arg4[%c0_3, %c0_4], %3 {strides = array<i32>} : memref<2x256xf32, #tpu.memory_space<vmem>>, vector<2x256xf32>,
    return
  }
  func.func @transform_0(%arg0: i32, %arg1: i32) -> (i32, i32) {
    %c0_i32 = arith.constant 0 : i32
    return %arg0, %arg1 : i32, i32
  }
  func.func @transform_1(%arg0: i32, %arg1: i32) -> (i32, i32) {
    %c0_i32 = arith.constant 0 : i32
    %c0_i32_0 = arith.constant 0 : i32
    return %c0_i32, %arg1 : i32, i32
  }
  func.func @transform_2(%arg0: i32, %arg1: i32) -> (i32, i32) {
    %c0_i32 = arith.constant 0 : i32
    return %arg0, %arg1 : i32, i32
  }
}

</mosaic_0001>

<bundles_post_ra>
// kernel: tpu_custom_call.1
= control target key start
LH: loop header
LB: loop body
LE: loop exit
PB: predicated region body
PF: predicated region fallthrough
CT: control target
= control target key end

     0   :  { %7 = vsyncpa [#allocation3], 0  ;;  %s172_s0 = inlined_call_operand.hbm [shape: f32[2,256], index: 0, kind: input, shape index: {}]   ;;  %s173_s1 = inlined_call_operand.hbm [shape: f32[1,256], index: 1, kind: input, shape index: {}]   ;;  %s174_s2 = inlined_call_operand.hbm [shape: f32[2,256], index: 2, kind: output, shape index: {}]  }
   0x1   :  { %8 = vsyncpa [#allocation6], 0 }
   0x2   :  { %9 = vsyncpa [#allocation4], 0  ;;  %s144_s9 = smov [#allocation2]   ;;  %s145_s11 = smov [#allocation5]  }
   0x3   :  { %s16_s10 = sshll.u32 %s144_s9, 4  ;;  %s26_s12 = sshll.u32 %s145_s11, 4  ;;  %s17_s10 = int_to_ptr.vmem [resolvable:$true] %s16_s10  ;;  %s27_s12 = int_to_ptr.vmem [resolvable:$true] %s26_s12 }
   0x4   :  { %s86_s13 = scalar_lea.vmem %s17_s10, 64  ;;  %p91_p1 = scmp.lt.s32.totalorder %s17_s10, %s17_s10 }
   0x5   :  { %p87_p0 = scmp.ne.s32.totalorder %s17_s10, %s86_s13  ;;  %p92_p2 = scmp.lt.s32.totalorder %s86_s13, %s86_s13 }
   0x7   :  { %p93_p3 = por %p92_p2, %p91_p1 }
   0x9   :  { %p94_p4 = pnand %p93_p3, %p87_p0 }
   0xb   :  { %97 = shalt.err (!%p94_p4)
}
   0xc   :  { %19 = dma.hbm_to_vmem [thread:$0]  %s172_s0, 64, %s17_s10, [#allocation3]  }
   0xd   :  { %s106_s16 = scalar_lea.vmem %s27_s12, 32  ;;  %p111_p6 = scmp.lt.s32.totalorder %s27_s12, %s27_s12 }
   0xe   :  { %p107_p5 = scmp.ne.s32.totalorder %s27_s12, %s106_s16  ;;  %p112_p7 = scmp.lt.s32.totalorder %s106_s16, %s106_s16 }
  0x10   :  { %p113_p8 = por %p112_p7, %p111_p6 }
  0x12   :  { %p114_p9 = pnand %p113_p8, %p107_p5 }
  0x14   :  { %117 = shalt.err (!%p114_p9)
}
  0x15   :  { %29 = dma.hbm_to_vmem [thread:$0]  %s173_s1, 32, %s27_s12, [#allocation6]  }
  0x16   :  { %138 = dma.done.wait [#allocation3], 64  }
  0x17   :  { %139 = vsyncadd [#allocation3], 4294967232 }
  0x18   :  { %140 = dma.done.wait [#allocation6], 32  }
  0x19   :  { %141 = vsyncadd [#allocation6], 4294967264  ;;  %v39_v0 = vlaneseq  ;;  %v146_v1 = vmov 1983009808   ;;  %v37_v7 = vld [vmem:[#allocation5] sm:$0x3] }
  0x1a   :  { %v49_v2 = vunpack.c.l.s4 %v146_v1  ;;  %v36_v12 = vld [vmem:[#allocation2] sm:$0xf]  ;;  %s147_s0 = smov [#allocation7]  }
  0x1b   :  { %v40_v3 = vshrl.u32 %v39_v0, 7  ;;  %s64_s19 = sshll.u32 %s147_s0, 4  ;;  %s65_s19 = int_to_ptr.vmem [resolvable:$true] %s64_s19 }
  0x1c   :  { %v50_v6 = vunpack.c.0.s8 %v49_v2  ;;  %s118_s1 = scalar_lea.vmem %s65_s19, 64  ;;  %p123_p11 = scmp.lt.s32.totalorder %s65_s19, %s65_s19 }
  0x1d   :  { %v41_v4 = vsub.s32 0, %v40_v3  ;;  %v45_v5 = vsub.s32 1, %v40_v3  ;;  %p119_p10 = scmp.ne.s32.totalorder %s65_s19, %s118_s1  ;;  %p124_p12 = scmp.lt.s32.totalorder %s118_s1, %s118_s1 }
  0x1e   :  { %v53_v10 = vsub.s32 %v50_v6, %v40_v3 }
  0x1f   :  { %v42_v8 = vrot.slane %v37_v7, %v41_v4  ;;  %v46_v9 = vrot.slane %v37_v7, %v45_v5  ;;  %p125_p13 = por %p124_p12, %p123_p11 }
  0x21   :  { %v47_v11 = vcombine.low %v42_v8, %v46_v9  ;;  %p126_p0 = pnand %p125_p13, %p119_p10 }
  0x23   :  { %v54_v13 = vrot.slane %v47_v11, %v53_v10 }
  0x25   :  { %v56_v14 = vadd.f32 %v54_v13, %v36_v12 }
  0x27   :  { %57 = vst [vmem:[#allocation7] sm:$0xf] %v56_v14 }
  0x28   :  { %129 = shalt.err (!%p126_p0)
}
  0x29   :  { %67 = dma.vmem_to_hbm [thread:$0]  %s65_s19, 64, %s174_s2, [#allocation4]  }
  0x2a   :  { %142 = dma.done.wait [#allocation4], 64  }
  0x2b   :  { %143 = vsyncadd [#allocation4], 4294967232 }
  0x2c   :  { %71 = vsyncpa [#allocation3], 1 }
  0x2d   :  { %72 = vsyncpa [#allocation6], 1 }
  0x2e   :  { %73 = vsyncpa [#allocation4], 1 }

</bundles_post_ra>
